<compile_context>
chip_gen: v6e
topology: v6e:2x2x1
jax: 0.10.0
libtpu: 0.0.40
codegen_flags: <defaults>
</compile_context>

<pallas_src>
import functools

import jax
import jax.numpy as jnp
import numpy as np
from jax.experimental import pallas as pl
from jax.experimental.pallas import tpu as pltpu

NEG_SLOPE = 0.01  # PyTorch nn.LeakyReLU default


def _lrelu(v):
    return jnp.where(v > 0, v, NEG_SLOPE * v)


def _make_kernel(mp, cp, nft, npart):
    """Kernel for a (mp, cp) lane-padded activation slab (rows = flattened (batch, part))."""

    def kernel(x_ref, w6_ref, wc_ref, o_ref):
        """x_ref : (mp, cp)     pooled features, channels on lanes 0..nft-1, rest zero
           w6_ref: (6, cp, cp)  packed k=3 conv tiles: rows [t*nft, t*nft+nft) = tap t
                                (c_in), row 3*nft = bias; columns = c_out
           wc_ref: (cp, cp)     packed 1x1 "connect" conv (rows 0..nft-1 weights,
                                row 3*nft = bias)
           o_ref : (mp, cp)     clip(sigmoid(head(x))*64+1, 1, 64); lane 0 is the result
        """
        row = jax.lax.broadcasted_iota(jnp.int32, (mp, cp), 0)
        lane = jax.lax.broadcasted_iota(jnp.int32, (mp, cp), 1)
        # Conv "same" padding: zero the +-1 shifted rows at segment (= batch element)
        # boundaries of the flattened (batch, part) row axis.
        not_seg_start = (row % npart) != 0
        not_seg_end = (row % npart) != (npart - 1)
        # Constant-1 bias lane: multiplies the bias row (3*nft) of the packed weights.
        bias_lane = (lane == 3 * nft).astype(jnp.float32)

        def conv3(v, idx):
            # +-1 position shift on the XLU (sublane roll) + boundary masking on the VPU.
            vl = jnp.where(not_seg_start, pltpu.roll(v, 1, axis=0), 0.0)       # v[l-1]
            vr = jnp.where(not_seg_end, pltpu.roll(v, mp - 1, axis=0), 0.0)    # v[l+1]
            # im2col packing with lane rolls: taps occupy lane blocks
            # [0,nft), [nft,2nft), [2nft,3nft); lane 3*nft is the constant-1 bias lane.
            cols = (vl
                    + pltpu.roll(v, nft, axis=1)
                    + pltpu.roll(vr, 2 * nft, axis=1)
                    + bias_lane)
            # One MXU matmul per conv (bias folded in).
            return jnp.dot(cols, w6_ref[idx], preferred_element_type=jnp.float32)

        # Two HeadResidualBlocks: x -> lrelu(x + conv2(lrelu(conv1(x))))
        h = x_ref[...]
        for idx in (0, 2):
            y = conv3(_lrelu(conv3(h, idx)), idx + 1)
            h = _lrelu(h + y)

        # HeadResidualBlock2: conv2(lrelu(conv1(h))) + connect(h)   (no trailing ReLU)
        y = conv3(_lrelu(conv3(h, 4)), 5)
        tx = jnp.dot(h + bias_lane, wc_ref[...], preferred_element_type=jnp.float32)
        pout = tx + y

        # sigmoid(pout) * 64 + 1, clipped to [1, 64] (exp overflow -> clipped 1, no NaN)
        param = 64.0 / (1.0 + jnp.exp(-pout)) + 1.0
        o_ref[...] = jnp.clip(param, 1.0, 64.0)

    return kernel


def _pack_conv3(w, b, nft, cp):
    """Conv1d(k=3) weight (C_out, C_in, 3) + bias -> one (cp, cp) im2col matmul tile."""
    w = np.asarray(w, np.float32)
    b = np.asarray(b, np.float32)
    cout, cin, k = w.shape
    assert k == 3 and cin <= nft and 3 * nft < cp and cout <= cp
    tile = np.zeros((cp, cp), np.float32)
    for tap in range(3):
        tile[tap * nft:tap * nft + cin, :cout] = w[:, :, tap].T
    tile[3 * nft, :cout] = b                       # bias row (matches the bias lane)
    return tile


def _pack_conv1(w, b, nft, cp):
    """1x1 'connect' Conv1d weight (C_out, C_in, 1) + bias -> (cp, cp) matmul tile."""
    w = np.asarray(w, np.float32)[:, :, 0]
    b = np.asarray(b, np.float32)
    cout, cin = w.shape
    tile = np.zeros((cp, cp), np.float32)
    tile[:cin, :cout] = w.T
    tile[3 * nft, :cout] = b                       # bias row (same bias lane as conv3)
    return tile


def make_param_head2(nft, npart, params, cp=128):
    """Returns a forward(fp) implementing ParamHead2.forward; weights are packed ONCE here."""
    # ---- one-time weight preparation (hoisted out of the per-call path) ----
    w6 = jnp.asarray(np.stack([
        _pack_conv3(params["w1a"], params["b1a"], nft, cp),
        _pack_conv3(params["w1b"], params["b1b"], nft, cp),
        _pack_conv3(params["w2a"], params["b2a"], nft, cp),
        _pack_conv3(params["w2b"], params["b2b"], nft, cp),
        _pack_conv3(params["w3a"], params["b3a"], nft, cp),
        _pack_conv3(params["w3b"], params["b3b"], nft, cp),
    ]))                                                       # (6, cp, cp)
    wc = jnp.asarray(_pack_conv1(params["wc"], params["bc"], nft, cp))   # (cp, cp)

    @jax.jit
    def _fwd(fp, w6, wc):
        n, c, h, w = fp.shape
        assert h % npart == 0

        # --- fp.view(n,c,npart,h//npart,w).permute(0,2,1,3,4).view(n,npart,-1) ---
        x = fp.reshape(n, c, npart, h // npart, w)
        x = jnp.transpose(x, (0, 2, 1, 3, 4)).reshape(n, npart, -1)
        lin = x.shape[-1]

        # --- AdaptiveAvgPool1d(nft): exact uniform windows when lin % nft == 0 ---
        # TODO(synk): non-divisible AdaptiveAvgPool1d window pattern not implemented.
        assert lin % nft == 0
        tp = x.reshape(n, npart, nft, lin // nft).mean(axis=-1)         # (n, npart, nft)

        m = n * npart                           # rows fed to the head kernel
        mp = ((m + 7) // 8) * 8                 # sublane-aligned row count
        x2d = jnp.pad(tp.reshape(m, nft).astype(jnp.float32),
                      ((0, mp - m), (0, cp - nft)))                     # (mp, cp)

        out2d = pl.pallas_call(
            _make_kernel(mp, cp, nft, npart),
            out_shape=jax.ShapeDtypeStruct((mp, cp), jnp.float32),
            grid_spec=pltpu.PrefetchScalarGridSpec(
                num_scalar_prefetch=0,
                grid=(1,),        # whole problem in one step: batch folded into matmul M
                in_specs=[
                    pl.BlockSpec((mp, cp), lambda i: (0, 0)),
                    pl.BlockSpec((6, cp, cp), lambda i: (0, 0, 0)),
                    pl.BlockSpec((cp, cp), lambda i: (0, 0)),
                ],
                out_specs=pl.BlockSpec((mp, cp), lambda i: (0, 0)),
            ),
            compiler_params=pltpu.CompilerParams(
                dimension_semantics=("arbitrary",)),
        )(x2d, w6, wc)

        return out2d[:m, 0]                                    # (n * npart,)

    return functools.partial(lambda fp, _w6=w6, _wc=wc: _fwd(fp, _w6, _wc))


def _reference(fp, P, nft, npart):
    """Pure-JAX reference matching PyTorch ParamHead2 semantics."""
    n, c, h, w = fp.shape
    x = fp.reshape(n, c, npart, h // npart, w)
    x = jnp.transpose(x, (0, 2, 1, 3, 4)).reshape(n, npart, -1)
    lin = x.shape[-1]
    tp = x.reshape(n, npart, nft, lin // nft).mean(axis=-1)    # AdaptiveAvgPool1d (exact)
    x = jnp.transpose(tp, (0, 2, 1))                           # (n, nft, npart) NCL

    def conv1d(v, w_, b_, pad):
        y = jax.lax.conv_general_dilated(
            v, w_, window_strides=(1,), padding=[(pad, pad)],
            dimension_numbers=("NCH", "OIH", "NCH"))
        return y + b_[None, :, None]

    def hrb(v, wa, ba, wb, bb):
        y = conv1d(_lrelu(conv1d(v, wa, ba, 1)), wb, bb, 1)
        return _lrelu(v + y)

    x = hrb(x, P["w1a"], P["b1a"], P["w1b"], P["b1b"])
    x = hrb(x, P["w2a"], P["b2a"], P["w2b"], P["b2b"])
    y = conv1d(_lrelu(conv1d(x, P["w3a"], P["b3a"], 1)), P["w3b"], P["b3b"], 1)
    tx = conv1d(x, P["wc"], P["bc"], 0)
    pout = (tx + y).reshape(n * npart)
    return jnp.clip(jax.nn.sigmoid(pout) * 64.0 + 1.0, 1.0, 64.0)


if __name__ == "__main__":
    N, C, H, W = 2, 4, 16, 16        # input feature map (n, c, h, w)
    NFT, NPART = 4, 8                # module hyper-parameters

    key = jax.random.PRNGKey(0)
    ks = jax.random.split(key, 16)
    fp = jax.random.normal(ks[0], (N, C, H, W), dtype=jnp.float32)

    def conv_w(k, cout, cin, ksz):
        return 0.3 * jax.random.normal(k, (cout, cin, ksz), dtype=jnp.float32)

    P = {
        "w1a": conv_w(ks[1], NFT, NFT, 3), "b1a": 0.1 * jax.random.normal(ks[2], (NFT,)),
        "w1b": conv_w(ks[3], NFT, NFT, 3), "b1b": 0.1 * jax.random.normal(ks[4], (NFT,)),
        "w2a": conv_w(ks[5], NFT, NFT, 3), "b2a": 0.1 * jax.random.normal(ks[6], (NFT,)),
        "w2b": conv_w(ks[7], NFT, NFT, 3), "b2b": 0.1 * jax.random.normal(ks[8], (NFT,)),
        "w3a": conv_w(ks[9], NFT, NFT, 3), "b3a": 0.1 * jax.random.normal(ks[10], (NFT,)),
        "w3b": conv_w(ks[11], 1, NFT, 3),  "b3b": 0.1 * jax.random.normal(ks[12], (1,)),
        "wc":  conv_w(ks[13], 1, NFT, 1),  "bc":  0.1 * jax.random.normal(ks[14], (1,)),
    }

    forward = make_param_head2(NFT, NPART, P)
    out = jax.block_until_ready(forward(fp))

    ref = _reference(fp, P, NFT, NPART)
    assert out.shape == (N * NPART,)
    assert bool(jnp.allclose(out, ref, atol=1e-3, rtol=1e-3)), (
        "mismatch vs reference, max abs err = "
        f"{float(jnp.max(jnp.abs(out - ref)))}")

    print("KERNEL_OK")
</pallas_src>

<mosaic_0001>
module attributes {stable_mosaic.version = 11 : i64} {
  func.func @kernel(%arg0: i32, %arg1: memref<16x128xf32, #tpu.memory_space<vmem>>, %arg2: memref<6x128x128xf32, #tpu.memory_space<vmem>>, %arg3: memref<128x128xf32, #tpu.memory_space<vmem>>, %arg4: memref<16x128xf32, #tpu.memory_space<vmem>>) attributes {dimension_semantics = [#tpu.dimension_semantics<arbitrary>], iteration_bounds = array<i64: 1>, scalar_prefetch = 0 : i64, scratch_operands = 0 : i64, tpu.core_type = #tpu.core_type<tc>, window_params = [{pipeline_mode = #tpu.pipeline_mode<synchronous>, transform_indices = @transform_0, window_bounds = array<i64: 16, 128>}, {pipeline_mode = #tpu.pipeline_mode<synchronous>, transform_indices = @transform_1, window_bounds = array<i64: 6, 128, 128>}, {pipeline_mode = #tpu.pipeline_mode<synchronous>, transform_indices = @transform_2, window_bounds = array<i64: 128, 128>}, {pipeline_mode = #tpu.pipeline_mode<synchronous>, transform_indices = @transform_3, window_bounds = array<i64: 16, 128>}]} {
    %0 = tpu.iota {dimensions = array<i32: 0>} : vector<16x128xi32>
    %1 = tpu.iota {dimensions = array<i32: 1>} : vector<16x128xi32>
    %c8_i32 = arith.constant 8 : i32
    %c0_i32 = arith.constant 0 : i32
    %2 = arith.cmpi eq, %c8_i32, %c0_i32 : i32
    %c1_i32 = arith.constant 1 : i32
    %3 = arith.select %2, %c1_i32, %c8_i32 : i32
    %4 = vector.broadcast %3 : i32 to vector<16x128xi32>
    %5 = arith.remsi %0, %4 : vector<16x128xi32>
    %c0_i32_0 = arith.constant 0 : i32
    %6 = vector.broadcast %c0_i32_0 : i32 to vector<16x128xi32>
    %7 = arith.cmpi ne, %5, %6 : vector<16x128xi32>
    %c0_i32_1 = arith.constant 0 : i32
    %8 = vector.broadcast %c0_i32_1 : i32 to vector<16x128xi32>
    %9 = arith.cmpi slt, %5, %8 : vector<16x128xi32>
    %c0_i32_2 = arith.constant 0 : i32
    %10 = arith.cmpi slt, %3, %c0_i32_2 : i32
    %11 = vector.broadcast %10 : i1 to vector<16x128xi1>
    %12 = vector.broadcast %11 : vector<16x128xi1> to vector<16x128xi1>
    %13 = arith.xori %9, %12 : vector<16x128xi1>
    %14 = arith.andi %13, %7 : vector<16x128xi1>
    %15 = vector.broadcast %3 : i32 to vector<16x128xi32>
    %16 = arith.addi %5, %15 : vector<16x128xi32>
    %17 = arith.select %14, %16, %5 : vector<16x128xi1>, vector<16x128xi32>
    %c0_i32_3 = arith.constant 0 : i32
    %18 = vector.broadcast %c0_i32_3 : i32 to vector<16x128xi32>
    %19 = arith.cmpi ne, %17, %18 : vector<16x128xi32>
    %c8_i32_4 = arith.constant 8 : i32
    %c0_i32_5 = arith.constant 0 : i32
    %20 = arith.cmpi eq, %c8_i32_4, %c0_i32_5 : i32
    %c1_i32_6 = arith.constant 1 : i32
    %21 = arith.select %20, %c1_i32_6, %c8_i32_4 : i32
    %22 = vector.broadcast %21 : i32 to vector<16x128xi32>
    %23 = arith.remsi %0, %22 : vector<16x128xi32>
    %c0_i32_7 = arith.constant 0 : i32
    %24 = vector.broadcast %c0_i32_7 : i32 to vector<16x128xi32>
    %25 = arith.cmpi ne, %23, %24 : vector<16x128xi32>
    %c0_i32_8 = arith.constant 0 : i32
    %26 = vector.broadcast %c0_i32_8 : i32 to vector<16x128xi32>
    %27 = arith.cmpi slt, %23, %26 : vector<16x128xi32>
    %c0_i32_9 = arith.constant 0 : i32
    %28 = arith.cmpi slt, %21, %c0_i32_9 : i32
    %29 = vector.broadcast %28 : i1 to vector<16x128xi1>
    %30 = vector.broadcast %29 : vector<16x128xi1> to vector<16x128xi1>
    %31 = arith.xori %27, %30 : vector<16x128xi1>
    %32 = arith.andi %31, %25 : vector<16x128xi1>
    %33 = vector.broadcast %21 : i32 to vector<16x128xi32>
    %34 = arith.addi %23, %33 : vector<16x128xi32>
    %35 = arith.select %32, %34, %23 : vector<16x128xi1>, vector<16x128xi32>
    %c7_i32 = arith.constant 7 : i32
    %36 = vector.broadcast %c7_i32 : i32 to vector<16x128xi32>
    %37 = arith.cmpi ne, %35, %36 : vector<16x128xi32>
    %c12_i32 = arith.constant 12 : i32
    %38 = vector.broadcast %c12_i32 : i32 to vector<16x128xi32>
    %39 = arith.cmpi eq, %1, %38 : vector<16x128xi32>
    %40 = arith.extui %39 : vector<16x128xi1> to vector<16x128xi32>
    %41 = arith.sitofp %40 : vector<16x128xi32> to vector<16x128xf32>
    %c0 = arith.constant 0 : index
    %c0_10 = arith.constant 0 : index
    %42 = vector.load %arg1[%c0, %c0_10] : memref<16x128xf32, #tpu.memory_space<vmem>>, vector<16x128xf32>
    %c1_i32_11 = arith.constant 1 : i32
    %43 = tpu.dynamic_rotate %42 by %c1_i32_11 dim 0 : vector<16x128xf32>, i32 -> vector<16x128xf32>
    %cst = arith.constant 0.000000e+00 : f32
    %44 = vector.broadcast %cst : f32 to vector<16x128xf32>
    %45 = arith.select %19, %43, %44 : vector<16x128xi1>, vector<16x128xf32>
    %c15_i32 = arith.constant 15 : i32
    %46 = tpu.dynamic_rotate %42 by %c15_i32 dim 0 : vector<16x128xf32>, i32 -> vector<16x128xf32>
    %cst_12 = arith.constant 0.000000e+00 : f32
    %47 = vector.broadcast %cst_12 : f32 to vector<16x128xf32>
    %48 = arith.select %37, %46, %47 : vector<16x128xi1>, vector<16x128xf32>
    %c4_i32 = arith.constant 4 : i32
    %49 = tpu.dynamic_rotate %42 by %c4_i32 dim 1 : vector<16x128xf32>, i32 -> vector<16x128xf32>
    %50 = arith.addf %45, %49 : vector<16x128xf32>
    %c8_i32_13 = arith.constant 8 : i32
    %51 = tpu.dynamic_rotate %48 by %c8_i32_13 dim 1 : vector<16x128xf32>, i32 -> vector<16x128xf32>
    %52 = arith.addf %50, %51 : vector<16x128xf32>
    %53 = arith.addf %52, %41 : vector<16x128xf32>
    %c0_14 = arith.constant 0 : index
    %c0_15 = arith.constant 0 : index
    %c0_16 = arith.constant 0 : index
    %54 = vector.load %arg2[%c0_14, %c0_15, %c0_16] : memref<6x128x128xf32, #tpu.memory_space<vmem>>, vector<1x128x128xf32>
    %55 = vector.shape_cast %54 : vector<1x128x128xf32> to vector<128x128xf32>
    %cst_17 = arith.constant dense<0.000000e+00> : vector<16x128xf32>
    %56 = tpu.matmul %53, %55, %cst_17 {dimension_numbers = #tpu.dot_dimension_numbers<[1], [0], [0], [1], [0, 0, 1, 1], [], []>} : vector<16x128xf32>, vector<128x128xf32>, vector<16x128xf32> -> vector<16x128xf32>
    %cst_18 = arith.constant 0.000000e+00 : f32
    %57 = vector.broadcast %cst_18 : f32 to vector<16x128xf32>
    %58 = arith.cmpf ogt, %56, %57 : vector<16x128xf32>
    %cst_19 = arith.constant 0.00999999977 : f32
    %59 = vector.broadcast %cst_19 : f32 to vector<16x128xf32>
    %60 = arith.mulf %59, %56 : vector<16x128xf32>
    %61 = arith.select %58, %56, %60 : vector<16x128xi1>, vector<16x128xf32>
    %c1_i32_20 = arith.constant 1 : i32
    %62 = tpu.dynamic_rotate %61 by %c1_i32_20 dim 0 : vector<16x128xf32>, i32 -> vector<16x128xf32>
    %cst_21 = arith.constant 0.000000e+00 : f32
    %63 = vector.broadcast %cst_21 : f32 to vector<16x128xf32>
    %64 = arith.select %19, %62, %63 : vector<16x128xi1>, vector<16x128xf32>
    %c15_i32_22 = arith.constant 15 : i32
    %65 = tpu.dynamic_rotate %61 by %c15_i32_22 dim 0 : vector<16x128xf32>, i32 -> vector<16x128xf32>
    %cst_23 = arith.constant 0.000000e+00 : f32
    %66 = vector.broadcast %cst_23 : f32 to vector<16x128xf32>
    %67 = arith.select %37, %65, %66 : vector<16x128xi1>, vector<16x128xf32>
    %c4_i32_24 = arith.constant 4 : i32
    %68 = tpu.dynamic_rotate %61 by %c4_i32_24 dim 1 : vector<16x128xf32>, i32 -> vector<16x128xf32>
    %69 = arith.addf %64, %68 : vector<16x128xf32>
    %c8_i32_25 = arith.constant 8 : i32
    %70 = tpu.dynamic_rotate %67 by %c8_i32_25 dim 1 : vector<16x128xf32>, i32 -> vector<16x128xf32>
    %71 = arith.addf %69, %70 : vector<16x128xf32>
    %72 = arith.addf %71, %41 : vector<16x128xf32>
    %c1 = arith.constant 1 : index
    %c0_26 = arith.constant 0 : index
    %c0_27 = arith.constant 0 : index
    %73 = vector.load %arg2[%c1, %c0_26, %c0_27] : memref<6x128x128xf32, #tpu.memory_space<vmem>>, vector<1x128x128xf32>
    %74 = vector.shape_cast %73 : vector<1x128x128xf32> to vector<128x128xf32>
    %cst_28 = arith.constant dense<0.000000e+00> : vector<16x128xf32>
    %75 = tpu.matmul %72, %74, %cst_28 {dimension_numbers = #tpu.dot_dimension_numbers<[1], [0], [0], [1], [0, 0, 1, 1], [], []>} : vector<16x128xf32>, vector<128x128xf32>, vector<16x128xf32> -> vector<16x128xf32>
    %76 = arith.addf %42, %75 : vector<16x128xf32>
    %cst_29 = arith.constant 0.000000e+00 : f32
    %77 = vector.broadcast %cst_29 : f32 to vector<16x128xf32>
    %78 = arith.cmpf ogt, %76, %77 : vector<16x128xf32>
    %cst_30 = arith.constant 0.00999999977 : f32
    %79 = vector.broadcast %cst_30 : f32 to vector<16x128xf32>
    %80 = arith.mulf %79, %76 : vector<16x128xf32>
    %81 = arith.select %78, %76, %80 : vector<16x128xi1>, vector<16x128xf32>
    %c1_i32_31 = arith.constant 1 : i32
    %82 = tpu.dynamic_rotate %81 by %c1_i32_31 dim 0 : vector<16x128xf32>, i32 -> vector<16x128xf32>
    %cst_32 = arith.constant 0.000000e+00 : f32
    %83 = vector.broadcast %cst_32 : f32 to vector<16x128xf32>
    %84 = arith.select %19, %82, %83 : vector<16x128xi1>, vector<16x128xf32>
    %c15_i32_33 = arith.constant 15 : i32
    %85 = tpu.dynamic_rotate %81 by %c15_i32_33 dim 0 : vector<16x128xf32>, i32 -> vector<16x128xf32>
    %cst_34 = arith.constant 0.000000e+00 : f32
    %86 = vector.broadcast %cst_34 : f32 to vector<16x128xf32>
    %87 = arith.select %37, %85, %86 : vector<16x128xi1>, vector<16x128xf32>
    %c4_i32_35 = arith.constant 4 : i32
    %88 = tpu.dynamic_rotate %81 by %c4_i32_35 dim 1 : vector<16x128xf32>, i32 -> vector<16x128xf32>
    %89 = arith.addf %84, %88 : vector<16x128xf32>
    %c8_i32_36 = arith.constant 8 : i32
    %90 = tpu.dynamic_rotate %87 by %c8_i32_36 dim 1 : vector<16x128xf32>, i32 -> vector<16x128xf32>
    %91 = arith.addf %89, %90 : vector<16x128xf32>
    %92 = arith.addf %91, %41 : vector<16x128xf32>
    %c2 = arith.constant 2 : index
    %c0_37 = arith.constant 0 : index
    %c0_38 = arith.constant 0 : index
    %93 = vector.load %arg2[%c2, %c0_37, %c0_38] : memref<6x128x128xf32, #tpu.memory_space<vmem>>, vector<1x128x128xf32>
    %94 = vector.shape_cast %93 : vector<1x128x128xf32> to vector<128x128xf32>
    %cst_39 = arith.constant dense<0.000000e+00> : vector<16x128xf32>
    %95 = tpu.matmul %92, %94, %cst_39 {dimension_numbers = #tpu.dot_dimension_numbers<[1], [0], [0], [1], [0, 0, 1, 1], [], []>} : vector<16x128xf32>, vector<128x128xf32>, vector<16x128xf32> -> vector<16x128xf32>
    %cst_40 = arith.constant 0.000000e+00 : f32
    %96 = vector.broadcast %cst_40 : f32 to vector<16x128xf32>
    %97 = arith.cmpf ogt, %95, %96 : vector<16x128xf32>
    %cst_41 = arith.constant 0.00999999977 : f32
    %98 = vector.broadcast %cst_41 : f32 to vector<16x128xf32>
    %99 = arith.mulf %98, %95 : vector<16x128xf32>
    %100 = arith.select %97, %95, %99 : vector<16x128xi1>, vector<16x128xf32>
    %c1_i32_42 = arith.constant 1 : i32
    %101 = tpu.dynamic_rotate %100 by %c1_i32_42 dim 0 : vector<16x128xf32>, i32 -> vector<16x128xf32>
    %cst_43 = arith.constant 0.000000e+00 : f32
    %102 = vector.broadcast %cst_43 : f32 to vector<16x128xf32>
    %103 = arith.select %19, %101, %102 : vector<16x128xi1>, vector<16x128xf32>
    %c15_i32_44 = arith.constant 15 : i32
    %104 = tpu.dynamic_rotate %100 by %c15_i32_44 dim 0 : vector<16x128xf32>, i32 -> vector<16x128xf32>
    %cst_45 = arith.constant 0.000000e+00 : f32
    %105 = vector.broadcast %cst_45 : f32 to vector<16x128xf32>
    %106 = arith.select %37, %104, %105 : vector<16x128xi1>, vector<16x128xf32>
    %c4_i32_46 = arith.constant 4 : i32
    %107 = tpu.dynamic_rotate %100 by %c4_i32_46 dim 1 : vector<16x128xf32>, i32 -> vector<16x128xf32>
    %108 = arith.addf %103, %107 : vector<16x128xf32>
    %c8_i32_47 = arith.constant 8 : i32
    %109 = tpu.dynamic_rotate %106 by %c8_i32_47 dim 1 : vector<16x128xf32>, i32 -> vector<16x128xf32>
    %110 = arith.addf %108, %109 : vector<16x128xf32>
    %111 = arith.addf %110, %41 : vector<16x128xf32>
    %c3 = arith.constant 3 : index
    %c0_48 = arith.constant 0 : index
    %c0_49 = arith.constant 0 : index
    %112 = vector.load %arg2[%c3, %c0_48, %c0_49] : memref<6x128x128xf32, #tpu.memory_space<vmem>>, vector<1x128x128xf32>
    %113 = vector.shape_cast %112 : vector<1x128x128xf32> to vector<128x128xf32>
    %cst_50 = arith.constant dense<0.000000e+00> : vector<16x128xf32>
    %114 = tpu.matmul %111, %113, %cst_50 {dimension_numbers = #tpu.dot_dimension_numbers<[1], [0], [0], [1], [0, 0, 1, 1], [], []>} : vector<16x128xf32>, vector<128x128xf32>, vector<16x128xf32> -> vector<16x128xf32>
    %115 = arith.addf %81, %114 : vector<16x128xf32>
    %cst_51 = arith.constant 0.000000e+00 : f32
    %116 = vector.broadcast %cst_51 : f32 to vector<16x128xf32>
    %117 = arith.cmpf ogt, %115, %116 : vector<16x128xf32>
    %cst_52 = arith.constant 0.00999999977 : f32
    %118 = vector.broadcast %cst_52 : f32 to vector<16x128xf32>
    %119 = arith.mulf %118, %115 : vector<16x128xf32>
    %120 = arith.select %117, %115, %119 : vector<16x128xi1>, vector<16x128xf32>
    %c1_i32_53 = arith.constant 1 : i32
    %121 = tpu.dynamic_rotate %120 by %c1_i32_53 dim 0 : vector<16x128xf32>, i32 -> vector<16x128xf32>
    %cst_54 = arith.constant 0.000000e+00 : f32
    %122 = vector.broadcast %cst_54 : f32 to vector<16x128xf32>
    %123 = arith.select %19, %121, %122 : vector<16x128xi1>, vector<16x128xf32>
    %c15_i32_55 = arith.constant 15 : i32
    %124 = tpu.dynamic_rotate %120 by %c15_i32_55 dim 0 : vector<16x128xf32>, i32 -> vector<16x128xf32>
    %cst_56 = arith.constant 0.000000e+00 : f32
    %125 = vector.broadcast %cst_56 : f32 to vector<16x128xf32>
    %126 = arith.select %37, %124, %125 : vector<16x128xi1>, vector<16x128xf32>
    %c4_i32_57 = arith.constant 4 : i32
    %127 = tpu.dynamic_rotate %120 by %c4_i32_57 dim 1 : vector<16x128xf32>, i32 -> vector<16x128xf32>
    %128 = arith.addf %123, %127 : vector<16x128xf32>
    %c8_i32_58 = arith.constant 8 : i32
    %129 = tpu.dynamic_rotate %126 by %c8_i32_58 dim 1 : vector<16x128xf32>, i32 -> vector<16x128xf32>
    %130 = arith.addf %128, %129 : vector<16x128xf32>
    %131 = arith.addf %130, %41 : vector<16x128xf32>
    %c4 = arith.constant 4 : index
    %c0_59 = arith.constant 0 : index
    %c0_60 = arith.constant 0 : index
    %132 = vector.load %arg2[%c4, %c0_59, %c0_60] : memref<6x128x128xf32, #tpu.memory_space<vmem>>, vector<1x128x128xf32>
    %133 = vector.shape_cast %132 : vector<1x128x128xf32> to vector<128x128xf32>
    %cst_61 = arith.constant dense<0.000000e+00> : vector<16x128xf32>
    %134 = tpu.matmul %131, %133, %cst_61 {dimension_numbers = #tpu.dot_dimension_numbers<[1], [0], [0], [1], [0, 0, 1, 1], [], []>} : vector<16x128xf32>, vector<128x128xf32>, vector<16x128xf32> -> vector<16x128xf32>
    %cst_62 = arith.constant 0.000000e+00 : f32
    %135 = vector.broadcast %cst_62 : f32 to vector<16x128xf32>
    %136 = arith.cmpf ogt, %134, %135 : vector<16x128xf32>
    %cst_63 = arith.constant 0.00999999977 : f32
    %137 = vector.broadcast %cst_63 : f32 to vector<16x128xf32>
    %138 = arith.mulf %137, %134 : vector<16x128xf32>
    %139 = arith.select %136, %134, %138 : vector<16x128xi1>, vector<16x128xf32>
    %c1_i32_64 = arith.constant 1 : i32
    %140 = tpu.dynamic_rotate %139 by %c1_i32_64 dim 0 : vector<16x128xf32>, i32 -> vector<16x128xf32>
    %cst_65 = arith.constant 0.000000e+00 : f32
    %141 = vector.broadcast %cst_65 : f32 to vector<16x128xf32>
    %142 = arith.select %19, %140, %141 : vector<16x128xi1>, vector<16x128xf32>
    %c15_i32_66 = arith.constant 15 : i32
    %143 = tpu.dynamic_rotate %139 by %c15_i32_66 dim 0 : vector<16x128xf32>, i32 -> vector<16x128xf32>
    %cst_67 = arith.constant 0.000000e+00 : f32
    %144 = vector.broadcast %cst_67 : f32 to vector<16x128xf32>
    %145 = arith.select %37, %143, %144 : vector<16x128xi1>, vector<16x128xf32>
    %c4_i32_68 = arith.constant 4 : i32
    %146 = tpu.dynamic_rotate %139 by %c4_i32_68 dim 1 : vector<16x128xf32>, i32 -> vector<16x128xf32>
    %147 = arith.addf %142, %146 : vector<16x128xf32>
    %c8_i32_69 = arith.constant 8 : i32
    %148 = tpu.dynamic_rotate %145 by %c8_i32_69 dim 1 : vector<16x128xf32>, i32 -> vector<16x128xf32>
    %149 = arith.addf %147, %148 : vector<16x128xf32>
    %150 = arith.addf %149, %41 : vector<16x128xf32>
    %c5 = arith.constant 5 : index
    %c0_70 = arith.constant 0 : index
    %c0_71 = arith.constant 0 : index
    %151 = vector.load %arg2[%c5, %c0_70, %c0_71] : memref<6x128x128xf32, #tpu.memory_space<vmem>>, vector<1x128x128xf32>
    %152 = vector.shape_cast %151 : vector<1x128x128xf32> to vector<128x128xf32>
    %cst_72 = arith.constant dense<0.000000e+00> : vector<16x128xf32>
    %153 = tpu.matmul %150, %152, %cst_72 {dimension_numbers = #tpu.dot_dimension_numbers<[1], [0], [0], [1], [0, 0, 1, 1], [], []>} : vector<16x128xf32>, vector<128x128xf32>, vector<16x128xf32> -> vector<16x128xf32>
    %154 = arith.addf %120, %41 : vector<16x128xf32>
    %c0_73 = arith.constant 0 : index
    %c0_74 = arith.constant 0 : index
    %155 = vector.load %arg3[%c0_73, %c0_74] : memref<128x128xf32, #tpu.memory_space<vmem>>, vector<128x128xf32>
    %cst_75 = arith.constant dense<0.000000e+00> : vector<16x128xf32>
    %156 = tpu.matmul %154, %155, %cst_75 {dimension_numbers = #tpu.dot_dimension_numbers<[1], [0], [0], [1], [0, 0, 1, 1], [], []>} : vector<16x128xf32>, vector<128x128xf32>, vector<16x128xf32> -> vector<16x128xf32>
    %157 = arith.addf %156, %153 : vector<16x128xf32>
    %cst_76 = arith.constant 0.000000e+00 : f32
    %158 = vector.broadcast %cst_76 : f32 to vector<16x128xf32>
    %159 = arith.subf %158, %157 : vector<16x128xf32>
    %160 = math.exp %159 : vector<16x128xf32>
    %cst_77 = arith.constant 1.000000e+00 : f32
    %161 = vector.broadcast %cst_77 : f32 to vector<16x128xf32>
    %162 = arith.addf %161, %160 : vector<16x128xf32>
    %cst_78 = arith.constant 6.400000e+01 : f32
    %163 = vector.broadcast %cst_78 : f32 to vector<16x128xf32>
    %164 = arith.divf %163, %162 : vector<16x128xf32>
    %cst_79 = arith.constant 1.000000e+00 : f32
    %165 = vector.broadcast %cst_79 : f32 to vector<16x128xf32>
    %166 = arith.addf %164, %165 : vector<16x128xf32>
    %cst_80 = arith.constant 1.000000e+00 : f32
    %cst_81 = arith.constant 6.400000e+01 : f32
    %167 = vector.broadcast %cst_80 : f32 to vector<16x128xf32>
    %168 = arith.maximumf %167, %166 : vector<16x128xf32>
    %169 = vector.broadcast %cst_81 : f32 to vector<16x128xf32>
    %170 = arith.minimumf %169, %168 : vector<16x128xf32>
    %c0_82 = arith.constant 0 : index
    %c0_83 = arith.constant 0 : index
    %171 = vector.load %arg4[%c0_82, %c0_83] : memref<16x128xf32, #tpu.memory_space<vmem>>, vector<16x128xf32>
    tpu.vector_store %arg4[%c0_82, %c0_83], %170 {strides = array<i32>} : memref<16x128xf32, #tpu.memory_space<vmem>>, vector<16x128xf32>,
    return
  }
  func.func @transform_0(%arg0: i32) -> (i32, i32) {
    %c0_i32 = arith.constant 0 : i32
    %c0_i32_0 = arith.constant 0 : i32
    %c0_i32_1 = arith.constant 0 : i32
    return %c0_i32, %c0_i32_0 : i32, i32
  }
  func.func @transform_1(%arg0: i32) -> (i32, i32, i32) {
    %c0_i32 = arith.constant 0 : i32
    %c0_i32_0 = arith.constant 0 : i32
    %c0_i32_1 = arith.constant 0 : i32
    %c0_i32_2 = arith.constant 0 : i32
    return %c0_i32, %c0_i32_0, %c0_i32_1 : i32, i32, i32
  }
  func.func @transform_2(%arg0: i32) -> (i32, i32) {
    %c0_i32 = arith.constant 0 : i32
    %c0_i32_0 = arith.constant 0 : i32
    %c0_i32_1 = arith.constant 0 : i32
    return %c0_i32, %c0_i32_0 : i32, i32
  }
  func.func @transform_3(%arg0: i32) -> (i32, i32) {
    %c0_i32 = arith.constant 0 : i32
    %c0_i32_0 = arith.constant 0 : i32
    %c0_i32_1 = arith.constant 0 : i32
    return %c0_i32, %c0_i32_0 : i32, i32
  }
}

</mosaic_0001>

<bundles_post_ra>
// kernel: _fwd.1
= control target key start
LH: loop header
LB: loop body
LE: loop exit
PB: predicated region body
PF: predicated region fallthrough
CT: control target
= control target key end

     0   :  { %8 = vsyncpa [#allocation3], 0  ;;  %s1334_s12 = smov [#allocation2]   ;;  %s1624_s0 = inlined_call_operand.vmem [shape: f32[16,128], index: 0, kind: input, shape index: {}]   ;;  %s1625_s1 = inlined_call_operand.hbm [shape: f32[6,128,128], index: 1, kind: input, shape index: {}]   ;;  %s1626_s2 = inlined_call_operand.vmem [shape: f32[128,128], index: 2, kind: input, shape index: {}]   ;;  %s1627_s3 = inlined_call_operand.vmem [shape: f32[16,128], index: 3, kind: output, shape index: {}]  }
   0x1   :  { %s16_s13 = sshll.u32 %s1334_s12, 4  ;;  %s17_s13 = int_to_ptr.vmem [resolvable:$true] %s16_s13 }
   0x2   :  { %s1320_s14 = scalar_lea.vmem %s17_s13, 12288  ;;  %p1325_p1 = scmp.lt.s32.totalorder %s17_s13, %s17_s13 }
   0x3   :  { %p1321_p0 = scmp.ne.s32.totalorder %s17_s13, %s1320_s14  ;;  %p1326_p2 = scmp.lt.s32.totalorder %s1320_s14, %s1320_s14 }
   0x5   :  { %p1327_p3 = por %p1326_p2, %p1325_p1 }
   0x7   :  { %p1328_p4 = pnand %p1327_p3, %p1321_p0 }
   0x9   :  { %1331 = shalt.err (!%p1328_p4)
}
   0xa   :  { %s1335_s15 = smov 128   ;;  %s1336_s16 = smov 8  }
   0xb   :  { %22 = dma.hbm_to_vmem [thread:$0]  %s1625_s1, 12288, %s17_s13, [#allocation3], %s1335_s15, %s1335_s15, %s1336_s16  }
   0xc   :  { %1332 = dma.done.wait [#allocation3], 12288  }
   0xd   :  { %1333 = vsyncadd [#allocation3], 4294955008  ;;  %v28_v0 = vlaneseq  ;;  %v1373_v4 = vld [vmem:[%s1624_s0] sm:$0xff]  ;;  %v1378_v5 = vld [vmem:[%s1624_s0 + $0x8] sm:$0xff]  ;;  %s1337_s1 = smov 4   ;;  %v1338_v42 = vmov 0.0  }
   0xe   :  { %v109_v7 = vld [vmem:[#allocation2 + $0x78] sm:$0xff]  ;;  %80 = vrot.lane.b32.xlu0 %v1373_v4, %s1337_s1  ;;  %v73_v9 = vrot.slane %v1373_v4, 1  ;;  %v74_v10 = vrot.slane %v1378_v5, 1  ;;  %v108_v11 = vld [vmem:[#allocation2 + $0x70] sm:$0xff]  ;;  %v107_v15 = vld [vmem:[#allocation2 + $0x68] sm:$0xff]  ;;  %v67_v31 = vrot.slane %v1378_v5, 7 }
   0xf   :  { %v1364_v1 = vshrl.u32 %v28_v0, 7  ;;  %1054 = vmatprep.subr.mxu0 %v109_v7  ;;  %v106_v17 = vld [vmem:[#allocation2 + $0x60] sm:$0xff]  ;;  %v105_v19 = vld [vmem:[#allocation2 + $0x58] sm:$0xff]  ;;  %v104_v20 = vld [vmem:[#allocation2 + $0x50] sm:$0xff]  ;;  %v66_v32 = vrot.slane %v1373_v4, 7  ;;  %v32_v35 = vand.u32 127, %v28_v0 }
  0x10   :  { %1055 = vmatpush3.msra.mxu0 %v109_v7  ;;  %v103_v21 = vld [vmem:[#allocation2 + $0x48] sm:$0xff]  ;;  %v102_v22 = vld [vmem:[#allocation2 + $0x40] sm:$0xff]  ;;  %v101_v23 = vld [vmem:[#allocation2 + $0x38] sm:$0xff] }
  0x11   :  { %v37_v2 = vand.u32 7, %v1364_v1  ;;  %v1368_v3 = vadd.s32 8, %v1364_v1  ;;  %vm75_vm0 = vcmp.lt.s32.totalorder %v1364_v1, 7  ;;  %1056 = vmatprep.subr.mxu0 %v108_v11  ;;  %v100_v24 = vld [vmem:[#allocation2 + $0x30] sm:$0xff]  ;;  %v99_v25 = vld [vmem:[#allocation2 + $0x28] sm:$0xff]  ;;  %v98_v26 = vld [vmem:[#allocation2 + $0x20] sm:$0xff] }
  0x12   :  { %v76_v12 = vsel %vm75_vm0, %v73_v9, %v74_v10  ;;  %v77_v14 = vsel %vm75_vm0, %v74_v10, %v73_v9  ;;  %1057 = vmatpush3.msra.mxu0 %v108_v11  ;;  %82 = vrot.lane.b32.xlu0 %v1378_v5, %s1337_s1  ;;  %v97_v27 = vld [vmem:[#allocation2 + $0x18] sm:$0xff]  ;;  %v96_v28 = vld [vmem:[#allocation2 + $0x10] sm:$0xff]  ;;  %v95_v29 = vld [vmem:[#allocation2 + $0x8] sm:$0xff]  ;;  %vm68_vm3 = vcmp.lt.s32.totalorder %v1364_v1, 1  ;;  %vm61_vm6 = vcmp.eq.s32.totalorder %v32_v35, 12 }
  0x13   :  { %v44_v6 = vand.u32 7, %v1368_v3  ;;  %vm1386_vm1 = vcmp.ne.s32.totalorder %v37_v2, 7  ;;  %1058 = vmatprep.subr.mxu0 %v107_v15  ;;  %v94_v30 = vld [vmem:[#allocation2] sm:$0xff]  ;;  %vm1415_vm4 = vcmp.ne.s32.totalorder %v37_v2, 0  ;;  %v70_v34 = vsel %vm68_vm3, %v67_v31, %v66_v32  ;;  %v233_v52 = vld [vmem:[#allocation2 + $0xf8] sm:$0xff]  ;;  %v232_v53 = vld [vmem:[#allocation2 + $0xf0] sm:$0xff] }
  0x14   :  { %v78_v16 = vsel %vm1386_vm1, %v76_v12, 0.0  ;;  %1059 = vmatpush3.msra.mxu0 %v107_v15  ;;  %v71_v36 = vsel %vm1415_vm4, %v70_v34, 0.0  ;;  %v69_v38 = vsel %vm68_vm3, %v66_v32, %v67_v31  ;;  %v1434_v43 = vsel %vm61_vm6, 1.0, %v1338_v42  ;;  %1089 = vmatprep.subr.mxu1 %v233_v52  ;;  %v231_v54 = vld [vmem:[#allocation2 + $0xe8] sm:$0xff]  ;;  %v230_v55 = vld [vmem:[#allocation2 + $0xe0] sm:$0xff]  ;;  %v229_v56 = vld [vmem:[#allocation2 + $0xd8] sm:$0xff] }
  0x15   :  { %vm1396_vm2 = vcmp.ne.s32.totalorder %v44_v6, 7  ;;  %86 = vrot.lane.b32.xlu1 %v78_v16, %s1336_s16  ;;  %1060 = vmatprep.subr.mxu0 %v106_v17  ;;  %vm1426_vm5 = vcmp.ne.s32.totalorder %v44_v6, 0  ;;  %v228_v57 = vld [vmem:[#allocation2 + $0xd0] sm:$0xff]  ;;  %v227_v58 = vld [vmem:[#allocation2 + $0xc8] sm:$0xff]  ;;  %v226_v59 = vld [vmem:[#allocation2 + $0xc0] sm:$0xff] }
  0x16   :  { %v79_v18 = vsel %vm1396_vm2, %v77_v14, 0.0  ;;  %1061 = vmatpush3.msra.mxu0 %v106_v17  ;;  %v72_v41 = vsel %vm1426_vm5, %v69_v38, 0.0  ;;  %1090 = vmatpush3.msra.mxu1 %v233_v52  ;;  %v225_v60 = vld [vmem:[#allocation2 + $0xb8] sm:$0xff]  ;;  %v224_v61 = vld [vmem:[#allocation2 + $0xb0] sm:$0xff]  ;;  %v223_v62 = vld [vmem:[#allocation2 + $0xa8] sm:$0xff] }
  0x17   :  { %1062 = vmatprep.subr.mxu0 %v105_v19  ;;  %1091 = vmatprep.subr.mxu1 %v232_v53  ;;  %v222_v63 = vld [vmem:[#allocation2 + $0xa0] sm:$0xff]  ;;  %v221_v0 = vld [vmem:[#allocation2 + $0x98] sm:$0xff]  ;;  %v220_v2 = vld [vmem:[#allocation2 + $0x90] sm:$0xff] }
  0x18   :  { %1063 = vmatpush3.msra.mxu0 %v105_v19  ;;  %1092 = vmatpush3.msra.mxu1 %v232_v53  ;;  %v219_v3 = vld [vmem:[#allocation2 + $0x88] sm:$0xff]  ;;  %v218_v6 = vld [vmem:[#allocation2 + $0x80] sm:$0xff]  ;;  %v347_v52 = vld [vmem:[#allocation2 + $0x118] sm:$0xff] }
  0x19   :  { %88 = vrot.lane.b32.xlu1 %v79_v18, %s1336_s16  ;;  %1064 = vmatprep.subr.mxu0 %v104_v20  ;;  %v356_v42 = vld [vmem:[#allocation2 + $0x160] sm:$0xff]  ;;  %v346_v53 = vld [vmem:[#allocation2 + $0x110] sm:$0xff] }
  0x1a   :  { %1065 = vmatpush3.msra.mxu0 %v104_v20  ;;  %1093 = vmatprep.subr.mxu1 %v231_v54 }
  0x1b   :  { %1066 = vmatprep.subr.mxu0 %v103_v21  ;;  %1094 = vmatpush3.msra.mxu1 %v231_v54  ;;  %v345_v54 = vld [vmem:[#allocation2 + $0x108] sm:$0xff] }
  0x1c   :  { %1067 = vmatpush3.msra.mxu0 %v103_v21  ;;  %1095 = vmatprep.subr.mxu1 %v230_v55 }
  0x1d   :  { %1068 = vmatprep.subr.mxu0 %v102_v22  ;;  %1096 = vmatpush3.msra.mxu1 %v230_v55 }
  0x1e   :  { %1069 = vmatpush3.msra.mxu0 %v102_v22  ;;  %1097 = vmatprep.subr.mxu1 %v229_v56 }
  0x1f   :  { %1070 = vmatprep.subr.mxu0 %v101_v23  ;;  %1098 = vmatpush3.msra.mxu1 %v229_v56 }
  0x20   :  { %1071 = vmatpush3.msra.mxu0 %v101_v23  ;;  %1099 = vmatprep.subr.mxu1 %v228_v57 }
  0x21   :  { %1072 = vmatprep.subr.mxu0 %v100_v24  ;;  %1100 = vmatpush3.msra.mxu1 %v228_v57  ;;  %v344_v57 = vld [vmem:[#allocation2 + $0x100] sm:$0xff] }
  0x22   :  { %1073 = vmatpush3.msra.mxu0 %v100_v24  ;;  %1101 = vmatprep.subr.mxu1 %v227_v58 }
  0x23   :  { %1074 = vmatprep.subr.mxu0 %v99_v25  ;;  %1102 = vmatpush3.msra.mxu1 %v227_v58 }
  0x24   :  { %1075 = vmatpush3.msra.mxu0 %v99_v25  ;;  %1103 = vmatprep.subr.mxu1 %v226_v59 }
  0x25   :  { %1076 = vmatprep.subr.mxu0 %v98_v26  ;;  %1104 = vmatpush3.msra.mxu1 %v226_v59 }
  0x26   :  { %1077 = vmatpush3.msra.mxu0 %v98_v26  ;;  %1105 = vmatprep.subr.mxu1 %v225_v60 }
  0x27   :  { %1078 = vmatprep.subr.mxu0 %v97_v27  ;;  %1106 = vmatpush3.msra.mxu1 %v225_v60 }
  0x28   :  { %1079 = vmatpush3.msra.mxu0 %v97_v27  ;;  %1107 = vmatprep.subr.mxu1 %v224_v61 }
  0x29   :  { %1080 = vmatprep.subr.mxu0 %v96_v28  ;;  %1108 = vmatpush3.msra.mxu1 %v224_v61 }
  0x2a   :  { %1081 = vmatpush3.msra.mxu0 %v96_v28  ;;  %1109 = vmatprep.subr.mxu1 %v223_v62 }
  0x2b   :  { %1082 = vmatprep.subr.mxu0 %v95_v29  ;;  %1110 = vmatpush3.msra.mxu1 %v223_v62 }
  0x2c   :  { %1083 = vmatpush3.msra.mxu0 %v95_v29  ;;  %1111 = vmatprep.subr.mxu1 %v222_v63 }
  0x2d   :  { %1084 = vmatprep.subr.mxu0 %v94_v30  ;;  %1112 = vmatpush3.msra.mxu1 %v222_v63 }
  0x2e   :  { %1085 = vmatpush3.msra.mxu0 %v94_v30  ;;  %1113 = vmatprep.subr.mxu1 %v221_v0 }
  0x2f   :  { %1114 = vmatpush3.msra.mxu1 %v221_v0 }
  0x30   :  { %1115 = vmatprep.subr.mxu1 %v220_v2 }
  0x31   :  { %1116 = vmatpush3.msra.mxu1 %v220_v2 }
  0x32   :  { %1117 = vmatprep.subr.mxu1 %v219_v3 }
  0x33   :  { %1118 = vmatpush3.msra.mxu1 %v219_v3 }
  0x34   :  { %1119 = vmatprep.subr.mxu1 %v218_v6 }
  0x35   :  { %1120 = vmatpush3.msra.mxu1 %v218_v6 }
  0x80   :  { %v81_v39 = vpop.permute.xlu0 %80 }
  0x81   :  { %v84_v40 = vadd.f32 %v81_v39, %v71_v36  ;;  %v359_v39 = vld [vmem:[#allocation2 + $0x178] sm:$0xff] }
  0x82   :  { %1124 = vmatprep.subr.mxu0 %v359_v39 }
  0x84   :  { %v83_v45 = vpop.permute.xlu0 %82 }
  0x85   :  { %v85_v47 = vadd.f32 %v83_v45, %v72_v41  ;;  %v357_v41 = vld [vmem:[#allocation2 + $0x168] sm:$0xff]  ;;  %v354_v45 = vld [vmem:[#allocation2 + $0x150] sm:$0xff] }
  0x87   :  { %v87_v44 = vpop.permute.xlu1 %86 }
  0x88   :  { %v90_v46 = vadd.f32 %v87_v44, %v84_v40  ;;  %v358_v40 = vld [vmem:[#allocation2 + $0x170] sm:$0xff]  ;;  %v355_v44 = vld [vmem:[#allocation2 + $0x158] sm:$0xff] }
  0x8a   :  { %v92_v48 = vadd.f32 %v1434_v43, %v90_v46  ;;  %v353_v46 = vld [vmem:[#allocation2 + $0x148] sm:$0xff] }
  0x8b   :  { %v89_v49 = vpop.permute.xlu1 %88 }
  0x8c   :  { %v91_v50 = vadd.f32 %v89_v49, %v85_v47  ;;  %1086 = vmatprep.mubr.f32.mxu0 %v92_v48  ;;  %v352_v47 = vld [vmem:[#allocation2 + $0x140] sm:$0xff]  ;;  %v351_v48 = vld [vmem:[#allocation2 + $0x138] sm:$0xff]  ;;  %v350_v49 = vld [vmem:[#allocation2 + $0x130] sm:$0xff] }
  0x8e   :  { %v93_v51 = vadd.f32 %v1434_v43, %v91_v50  ;;  %v349_v50 = vld [vmem:[#allocation2 + $0x128] sm:$0xff] }
  0x90   :  { %1087 = vmatmul.mubr.f32.vlgmr.msra.gmra.mxu0 %v93_v51  ;;  %v348_v51 = vld [vmem:[#allocation2 + $0x120] sm:$0xff] }
  0x91   :  { %1125 = vmatpush3.msra.mxu0 %v359_v39  ;;  %v471_v39 = vld [vmem:[#allocation2 + $0x198] sm:$0xff] }
  0x92   :  { %1126 = vmatprep.subr.mxu0 %v358_v40 }
  0x93   :  { %1127 = vmatpush3.msra.mxu0 %v358_v40  ;;  %v470_v40 = vld [vmem:[#allocation2 + $0x190] sm:$0xff] }
  0x94   :  { %1128 = vmatprep.subr.mxu0 %v357_v41 }
  0x95   :  { %1129 = vmatpush3.msra.mxu0 %v357_v41  ;;  %v469_v41 = vld [vmem:[#allocation2 + $0x188] sm:$0xff] }
  0x96   :  { %1130 = vmatprep.subr.mxu0 %v356_v42 }
  0x97   :  { %1131 = vmatpush3.msra.mxu0 %v356_v42  ;;  %v468_v42 = vld [vmem:[#allocation2 + $0x180] sm:$0xff] }
  0x98   :  { %1132 = vmatprep.subr.mxu0 %v355_v44 }
  0x99   :  { %1133 = vmatpush3.msra.mxu0 %v355_v44 }
  0x9a   :  { %1134 = vmatprep.subr.mxu0 %v354_v45 }
  0x9b   :  { %1135 = vmatpush3.msra.mxu0 %v354_v45 }
  0x9c   :  { %1136 = vmatprep.subr.mxu0 %v353_v46 }
  0x9d   :  { %1137 = vmatpush3.msra.mxu0 %v353_v46 }
  0x9e   :  { %1138 = vmatprep.subr.mxu0 %v352_v47 }
  0x9f   :  { %1139 = vmatpush3.msra.mxu0 %v352_v47 }
  0xa0   :  { %1140 = vmatprep.subr.mxu0 %v351_v48 }
  0xa1   :  { %1141 = vmatpush3.msra.mxu0 %v351_v48 }
  0xa2   :  { %1142 = vmatprep.subr.mxu0 %v350_v49 }
  0xa3   :  { %1143 = vmatpush3.msra.mxu0 %v350_v49 }
  0xa4   :  { %1144 = vmatprep.subr.mxu0 %v349_v50 }
  0xa5   :  { %1145 = vmatpush3.msra.mxu0 %v349_v50 }
  0xa6   :  { %1146 = vmatprep.subr.mxu0 %v348_v51 }
  0xa7   :  { %1147 = vmatpush3.msra.mxu0 %v348_v51 }
  0xa8   :  { %1148 = vmatprep.subr.mxu0 %v347_v52 }
  0xa9   :  { %1149 = vmatpush3.msra.mxu0 %v347_v52 }
  0xaa   :  { %1150 = vmatprep.subr.mxu0 %v346_v53 }
  0xab   :  { %1151 = vmatpush3.msra.mxu0 %v346_v53 }
  0xac   :  { %1152 = vmatprep.subr.mxu0 %v345_v54 }
  0xad   :  { %1153 = vmatpush3.msra.mxu0 %v345_v54 }
  0xae   :  { %1154 = vmatprep.subr.mxu0 %v344_v57 }
  0xaf   :  { %1155 = vmatpush3.msra.mxu0 %v344_v57 }
 0x150   :  { %v1088_v7 = vpop.f32.mrf.mxu0 }
 0x151   :  { %vm186_vm7 = vcmp.gt.f32.partialorder %v1088_v7, 0.0  ;;  %v188_v9 = vmul.f32 0.01, %v1088_v7 }
 0x152   :  { %v176_v10 = vpop.f32.mrf.mxu0 }
 0x153   :  { %vm185_vm8 = vcmp.gt.f32.partialorder %v176_v10, 0.0  ;;  %v187_v11 = vmul.f32 0.01, %v176_v10  ;;  %v190_v12 = vsel %vm186_vm7, %v1088_v7, %v188_v9 }
 0x154   :  { %205 = vrot.lane.b32.xlu1 %v190_v12, %s1337_s1  ;;  %v192_v15 = vrot.slane %v190_v12, 7  ;;  %v198_v16 = vrot.slane %v190_v12, 1 }
 0x155   :  { %v189_v14 = vsel %vm185_vm8, %v176_v10, %v187_v11 }
 0x156   :  { %203 = vrot.lane.b32.xlu0 %v189_v14, %s1337_s1  ;;  %v191_v17 = vrot.slane %v189_v14, 7  ;;  %v197_v18 = vrot.slane %v189_v14, 1 }
 0x158   :  { %v200_v19 = vsel %vm75_vm0, %v198_v16, %v197_v18  ;;  %v199_v20 = vsel %vm75_vm0, %v197_v18, %v198_v16  ;;  %v193_v21 = vsel %vm68_vm3, %v191_v17, %v192_v15  ;;  %v194_v22 = vsel %vm68_vm3, %v192_v15, %v191_v17 }
 0x159   :  { %v202_v23 = vsel %vm1396_vm2, %v200_v19, 0.0  ;;  %v201_v24 = vsel %vm1386_vm1, %v199_v20, 0.0  ;;  %v196_v27 = vsel %vm1426_vm5, %v193_v21, 0.0  ;;  %v195_v28 = vsel %vm1415_vm4, %v194_v22, 0.0 }
 0x15a   :  { %211 = vrot.lane.b32.xlu1 %v202_v23, %s1336_s16  ;;  %209 = vrot.lane.b32.xlu0 %v201_v24, %s1336_s16 }
 0x1c6   :  { %v206_v25 = vpop.permute.xlu1 %205 }
 0x1c7   :  { %v208_v29 = vadd.f32 %v206_v25, %v196_v27  ;;  %v483_v25 = vld [vmem:[#allocation2 + $0x1f8] sm:$0xff]  ;;  %v481_v27 = vld [vmem:[#allocation2 + $0x1e8] sm:$0xff] }
 0x1c8   :  { %v204_v26 = vpop.permute.xlu0 %203  ;;  %1159 = vmatprep.subr.mxu1 %v483_v25 }
 0x1c9   :  { %v207_v30 = vadd.f32 %v204_v26, %v195_v28  ;;  %v482_v26 = vld [vmem:[#allocation2 + $0x1f0] sm:$0xff]  ;;  %v480_v28 = vld [vmem:[#allocation2 + $0x1e0] sm:$0xff] }
 0x1cc   :  { %v212_v31 = vpop.permute.xlu1 %211  ;;  %v210_v32 = vpop.permute.xlu0 %209 }
 0x1cd   :  { %v214_v34 = vadd.f32 %v212_v31, %v208_v29  ;;  %v213_v35 = vadd.f32 %v210_v32, %v207_v30  ;;  %v479_v29 = vld [vmem:[#allocation2 + $0x1d8] sm:$0xff]  ;;  %v478_v30 = vld [vmem:[#allocation2 + $0x1d0] sm:$0xff]  ;;  %v477_v31 = vld [vmem:[#allocation2 + $0x1c8] sm:$0xff] }
 0x1ce   :  { %v476_v32 = vld [vmem:[#allocation2 + $0x1c0] sm:$0xff] }
 0x1cf   :  { %v216_v36 = vadd.f32 %v1434_v43, %v214_v34  ;;  %v215_v38 = vadd.f32 %v1434_v43, %v213_v35  ;;  %v475_v34 = vld [vmem:[#allocation2 + $0x1b8] sm:$0xff]  ;;  %v474_v35 = vld [vmem:[#allocation2 + $0x1b0] sm:$0xff] }
 0x1d1   :  { %1121 = vmatprep.mubr.f32.mxu1 %v215_v38  ;;  %v472_v38 = vld [vmem:[#allocation2 + $0x1a0] sm:$0xff] }
 0x1d2   :  { %1122 = vmatmul.mubr.f32.vlgmr.msra.gmra.mxu1 %v216_v36  ;;  %v473_v36 = vld [vmem:[#allocation2 + $0x1a8] sm:$0xff] }
 0x1d3   :  { %1160 = vmatpush3.msra.mxu1 %v483_v25  ;;  %v597_v25 = vld [vmem:[#allocation2 + $0x218] sm:$0xff] }
 0x1d4   :  { %1161 = vmatprep.subr.mxu1 %v482_v26 }
 0x1d5   :  { %1162 = vmatpush3.msra.mxu1 %v482_v26  ;;  %v596_v26 = vld [vmem:[#allocation2 + $0x210] sm:$0xff] }
 0x1d6   :  { %1163 = vmatprep.subr.mxu1 %v481_v27 }
 0x1d7   :  { %1164 = vmatpush3.msra.mxu1 %v481_v27  ;;  %v595_v27 = vld [vmem:[#allocation2 + $0x208] sm:$0xff] }
 0x1d8   :  { %1165 = vmatprep.subr.mxu1 %v480_v28 }
 0x1d9   :  { %1166 = vmatpush3.msra.mxu1 %v480_v28 }
 0x1da   :  { %1167 = vmatprep.subr.mxu1 %v479_v29 }
 0x1db   :  { %1168 = vmatpush3.msra.mxu1 %v479_v29  ;;  %v594_v29 = vld [vmem:[#allocation2 + $0x200] sm:$0xff] }
 0x1dc   :  { %1169 = vmatprep.subr.mxu1 %v478_v30 }
 0x1dd   :  { %1170 = vmatpush3.msra.mxu1 %v478_v30 }
 0x1de   :  { %1171 = vmatprep.subr.mxu1 %v477_v31 }
 0x1df   :  { %1172 = vmatpush3.msra.mxu1 %v477_v31 }
 0x1e0   :  { %1173 = vmatprep.subr.mxu1 %v476_v32 }
 0x1e1   :  { %1174 = vmatpush3.msra.mxu1 %v476_v32  ;;  %v826_v32 = vld [vmem:[%s1626_s2 + $0x78] sm:$0xff] }
 0x1e2   :  { %1175 = vmatprep.subr.mxu1 %v475_v34 }
 0x1e3   :  { %1176 = vmatpush3.msra.mxu1 %v475_v34 }
 0x1e4   :  { %1177 = vmatprep.subr.mxu1 %v474_v35 }
 0x1e5   :  { %1178 = vmatpush3.msra.mxu1 %v474_v35 }
 0x1e6   :  { %1179 = vmatprep.subr.mxu1 %v473_v36 }
 0x1e7   :  { %1180 = vmatpush3.msra.mxu1 %v473_v36 }
 0x1e8   :  { %1181 = vmatprep.subr.mxu1 %v472_v38 }
 0x1e9   :  { %1182 = vmatpush3.msra.mxu1 %v472_v38 }
 0x1ea   :  { %1183 = vmatprep.subr.mxu1 %v471_v39 }
 0x1eb   :  { %1184 = vmatpush3.msra.mxu1 %v471_v39 }
 0x1ec   :  { %1185 = vmatprep.subr.mxu1 %v470_v40 }
 0x1ed   :  { %1186 = vmatpush3.msra.mxu1 %v470_v40 }
 0x1ee   :  { %1187 = vmatprep.subr.mxu1 %v469_v41 }
 0x1ef   :  { %1188 = vmatpush3.msra.mxu1 %v469_v41 }
 0x1f0   :  { %1189 = vmatprep.subr.mxu1 %v468_v42 }
 0x1f1   :  { %1190 = vmatpush3.msra.mxu1 %v468_v42 }
 0x292   :  { %v1123_v55 = vpop.f32.mrf.mxu1 }
 0x293   :  { %v310_v56 = vadd.f32 %v1123_v55, %v1378_v5 }
 0x294   :  { %v300_v58 = vpop.f32.mrf.mxu1 }
 0x295   :  { %vm312_vm9 = vcmp.gt.f32.partialorder %v310_v56, 0.0  ;;  %v314_v59 = vmul.f32 0.01, %v310_v56  ;;  %v309_v60 = vadd.f32 %v300_v58, %v1373_v4 }
 0x297   :  { %vm311_vm10 = vcmp.gt.f32.partialorder %v309_v60, 0.0  ;;  %v313_v61 = vmul.f32 0.01, %v309_v60  ;;  %v1462_v62 = vsel %vm312_vm9, %v310_v56, %v314_v59 }
 0x298   :  { %331 = vrot.lane.b32.xlu1 %v1462_v62, %s1337_s1  ;;  %v324_v0 = vrot.slane %v1462_v62, 1  ;;  %v318_v9 = vrot.slane %v1462_v62, 7 }
 0x299   :  { %v1466_v63 = vsel %vm311_vm10, %v309_v60, %v313_v61 }
 0x29a   :  { %329 = vrot.lane.b32.xlu0 %v1466_v63, %s1337_s1  ;;  %v323_v5 = vrot.slane %v1466_v63, 1  ;;  %v317_v7 = vrot.slane %v1466_v63, 7 }
 0x29c   :  { %v326_v4 = vsel %vm75_vm0, %v324_v0, %v323_v5  ;;  %v325_v2 = vsel %vm75_vm0, %v323_v5, %v324_v0  ;;  %v319_v10 = vsel %vm68_vm3, %v317_v7, %v318_v9  ;;  %v320_v11 = vsel %vm68_vm3, %v318_v9, %v317_v7 }
 0x29d   :  { %v328_v3 = vsel %vm1396_vm2, %v326_v4, 0.0  ;;  %v327_v6 = vsel %vm1386_vm1, %v325_v2, 0.0  ;;  %v322_v15 = vsel %vm1426_vm5, %v319_v10, 0.0  ;;  %v321_v16 = vsel %vm1415_vm4, %v320_v11, 0.0 }
 0x29e   :  { %337 = vrot.lane.b32.xlu1 %v328_v3, %s1336_s16  ;;  %335 = vrot.lane.b32.xlu0 %v327_v6, %s1336_s16 }
 0x30a   :  { %v332_v12 = vpop.permute.xlu1 %331 }
 0x30b   :  { %v334_v17 = vadd.f32 %v332_v12, %v322_v15  ;;  %v609_v12 = vld [vmem:[#allocation2 + $0x278] sm:$0xff]  ;;  %v607_v15 = vld [vmem:[#allocation2 + $0x268] sm:$0xff] }
 0x30c   :  { %v330_v14 = vpop.permute.xlu0 %329  ;;  %1194 = vmatprep.subr.mxu0 %v609_v12 }
 0x30d   :  { %v333_v18 = vadd.f32 %v330_v14, %v321_v16  ;;  %v608_v14 = vld [vmem:[#allocation2 + $0x270] sm:$0xff]  ;;  %v606_v16 = vld [vmem:[#allocation2 + $0x260] sm:$0xff] }
 0x310   :  { %v338_v19 = vpop.permute.xlu1 %337  ;;  %v336_v20 = vpop.permute.xlu0 %335 }
 0x311   :  { %v340_v21 = vadd.f32 %v338_v19, %v334_v17  ;;  %v339_v22 = vadd.f32 %v336_v20, %v333_v18  ;;  %v605_v17 = vld [vmem:[#allocation2 + $0x258] sm:$0xff]  ;;  %v604_v18 = vld [vmem:[#allocation2 + $0x250] sm:$0xff]  ;;  %v603_v19 = vld [vmem:[#allocation2 + $0x248] sm:$0xff] }
 0x312   :  { %v602_v20 = vld [vmem:[#allocation2 + $0x240] sm:$0xff] }
 0x313   :  { %v342_v23 = vadd.f32 %v1434_v43, %v340_v21  ;;  %v341_v24 = vadd.f32 %v1434_v43, %v339_v22  ;;  %v601_v21 = vld [vmem:[#allocation2 + $0x238] sm:$0xff]  ;;  %v600_v22 = vld [vmem:[#allocation2 + $0x230] sm:$0xff] }
 0x315   :  { %1156 = vmatprep.mubr.f32.mxu0 %v341_v24  ;;  %v598_v24 = vld [vmem:[#allocation2 + $0x220] sm:$0xff] }
 0x316   :  { %1157 = vmatmul.mubr.f32.vlgmr.msra.gmra.mxu0 %v342_v23  ;;  %v599_v23 = vld [vmem:[#allocation2 + $0x228] sm:$0xff] }
 0x317   :  { %1195 = vmatpush3.msra.mxu0 %v609_v12  ;;  %v815_v12 = vld [vmem:[%s1626_s2 + $0x20] sm:$0xff] }
 0x318   :  { %1196 = vmatprep.subr.mxu0 %v608_v14 }
 0x319   :  { %1197 = vmatpush3.msra.mxu0 %v608_v14  ;;  %v814_v14 = vld [vmem:[%s1626_s2 + $0x18] sm:$0xff] }
 0x31a   :  { %1198 = vmatprep.subr.mxu0 %v607_v15 }
 0x31b   :  { %1199 = vmatpush3.msra.mxu0 %v607_v15  ;;  %v813_v15 = vld [vmem:[%s1626_s2 + $0x10] sm:$0xff] }
 0x31c   :  { %1200 = vmatprep.subr.mxu0 %v606_v16 }
 0x31d   :  { %1201 = vmatpush3.msra.mxu0 %v606_v16  ;;  %v812_v16 = vld [vmem:[%s1626_s2 + $0x8] sm:$0xff] }
 0x31e   :  { %1202 = vmatprep.subr.mxu0 %v605_v17 }
 0x31f   :  { %1203 = vmatpush3.msra.mxu0 %v605_v17  ;;  %v811_v17 = vld [vmem:[%s1626_s2] sm:$0xff] }
 0x320   :  { %1204 = vmatprep.subr.mxu0 %v604_v18 }
 0x321   :  { %1205 = vmatpush3.msra.mxu0 %v604_v18 }
 0x322   :  { %1206 = vmatprep.subr.mxu0 %v603_v19 }
 0x323   :  { %1207 = vmatpush3.msra.mxu0 %v603_v19  ;;  %v733_v19 = vld [vmem:[#allocation2 + $0x2f8] sm:$0xff] }
 0x324   :  { %1208 = vmatprep.subr.mxu0 %v602_v20  ;;  %1229 = vmatprep.subr.mxu1 %v733_v19 }
 0x325   :  { %1209 = vmatpush3.msra.mxu0 %v602_v20  ;;  %v732_v20 = vld [vmem:[#allocation2 + $0x2f0] sm:$0xff] }
 0x326   :  { %1210 = vmatprep.subr.mxu0 %v601_v21 }
 0x327   :  { %1211 = vmatpush3.msra.mxu0 %v601_v21  ;;  %v731_v21 = vld [vmem:[#allocation2 + $0x2e8] sm:$0xff] }
 0x328   :  { %1212 = vmatprep.subr.mxu0 %v600_v22 }
 0x329   :  { %1213 = vmatpush3.msra.mxu0 %v600_v22  ;;  %v730_v22 = vld [vmem:[#allocation2 + $0x2e0] sm:$0xff] }
 0x32a   :  { %1214 = vmatprep.subr.mxu0 %v599_v23 }
 0x32b   :  { %1215 = vmatpush3.msra.mxu0 %v599_v23  ;;  %v729_v23 = vld [vmem:[#allocation2 + $0x2d8] sm:$0xff] }
 0x32c   :  { %1216 = vmatprep.subr.mxu0 %v598_v24 }
 0x32d   :  { %1217 = vmatpush3.msra.mxu0 %v598_v24  ;;  %v728_v24 = vld [vmem:[#allocation2 + $0x2d0] sm:$0xff] }
 0x32e   :  { %1218 = vmatprep.subr.mxu0 %v597_v25 }
 0x32f   :  { %1219 = vmatpush3.msra.mxu0 %v597_v25  ;;  %v727_v25 = vld [vmem:[#allocation2 + $0x2c8] sm:$0xff] }
 0x330   :  { %1220 = vmatprep.subr.mxu0 %v596_v26 }
 0x331   :  { %1221 = vmatpush3.msra.mxu0 %v596_v26  ;;  %v726_v26 = vld [vmem:[#allocation2 + $0x2c0] sm:$0xff] }
 0x332   :  { %1222 = vmatprep.subr.mxu0 %v595_v27 }
 0x333   :  { %1223 = vmatpush3.msra.mxu0 %v595_v27  ;;  %v725_v27 = vld [vmem:[#allocation2 + $0x2b8] sm:$0xff] }
 0x334   :  { %1224 = vmatprep.subr.mxu0 %v594_v29 }
 0x335   :  { %1225 = vmatpush3.msra.mxu0 %v594_v29  ;;  %v723_v29 = vld [vmem:[#allocation2 + $0x2a8] sm:$0xff] }
 0x336   :  { %1264 = vmatprep.subr.mxu0 %v826_v32 }
 0x3d6   :  { %v1158_v44 = vpop.f32.mrf.mxu0 }
 0x3d7   :  { %vm436_vm11 = vcmp.gt.f32.partialorder %v1158_v44, 0.0  ;;  %v438_v45 = vmul.f32 0.01, %v1158_v44 }
 0x3d8   :  { %v426_v46 = vpop.f32.mrf.mxu0 }
 0x3d9   :  { %vm435_vm12 = vcmp.gt.f32.partialorder %v426_v46, 0.0  ;;  %v437_v47 = vmul.f32 0.01, %v426_v46  ;;  %v440_v48 = vsel %vm436_vm11, %v1158_v44, %v438_v45 }
 0x3da   :  { %455 = vrot.lane.b32.xlu1 %v440_v48, %s1337_s1  ;;  %v442_v50 = vrot.slane %v440_v48, 7  ;;  %v448_v51 = vrot.slane %v440_v48, 1 }
 0x3db   :  { %v439_v49 = vsel %vm435_vm12, %v426_v46, %v437_v47 }
 0x3dc   :  { %453 = vrot.lane.b32.xlu0 %v439_v49, %s1337_s1  ;;  %v441_v52 = vrot.slane %v439_v49, 7  ;;  %v447_v53 = vrot.slane %v439_v49, 1 }
 0x3de   :  { %v450_v54 = vsel %vm75_vm0, %v448_v51, %v447_v53  ;;  %v449_v55 = vsel %vm75_vm0, %v447_v53, %v448_v51  ;;  %v443_v56 = vsel %vm68_vm3, %v441_v52, %v442_v50  ;;  %v444_v57 = vsel %vm68_vm3, %v442_v50, %v441_v52 }
 0x3df   :  { %v452_v58 = vsel %vm1396_vm2, %v450_v54, 0.0  ;;  %v451_v59 = vsel %vm1386_vm1, %v449_v55, 0.0  ;;  %v446_v5 = vsel %vm1426_vm5, %v443_v56, 0.0  ;;  %v445_v0 = vsel %vm1415_vm4, %v444_v57, 0.0 }
 0x3e0   :  { %461 = vrot.lane.b32.xlu1 %v452_v58, %s1336_s16  ;;  %459 = vrot.lane.b32.xlu0 %v451_v59, %s1336_s16 }
 0x44c   :  { %v456_v60 = vpop.permute.xlu1 %455 }
 0x44d   :  { %v458_v4 = vadd.f32 %v456_v60, %v446_v5 }
 0x44e   :  { %v454_v61 = vpop.permute.xlu0 %453 }
 0x44f   :  { %v457_v2 = vadd.f32 %v454_v61, %v445_v0  ;;  %v825_v61 = vld [vmem:[%s1626_s2 + $0x70] sm:$0xff]  ;;  %v824_v0 = vld [vmem:[%s1626_s2 + $0x68] sm:$0xff] }
 0x452   :  { %v462_v3 = vpop.permute.xlu1 %461  ;;  %v460_v6 = vpop.permute.xlu0 %459 }
 0x453   :  { %v464_v7 = vadd.f32 %v462_v3, %v458_v4  ;;  %v463_v9 = vadd.f32 %v460_v6, %v457_v2  ;;  %v823_v4 = vld [vmem:[%s1626_s2 + $0x60] sm:$0xff]  ;;  %v822_v2 = vld [vmem:[%s1626_s2 + $0x58] sm:$0xff]  ;;  %v821_v3 = vld [vmem:[%s1626_s2 + $0x50] sm:$0xff] }
 0x454   :  { %v820_v6 = vld [vmem:[%s1626_s2 + $0x48] sm:$0xff] }
 0x455   :  { %v466_v10 = vadd.f32 %v1434_v43, %v464_v7  ;;  %v465_v11 = vadd.f32 %v1434_v43, %v463_v9  ;;  %v819_v7 = vld [vmem:[%s1626_s2 + $0x40] sm:$0xff]  ;;  %v818_v9 = vld [vmem:[%s1626_s2 + $0x38] sm:$0xff] }
 0x457   :  { %1191 = vmatprep.mubr.f32.mxu1 %v465_v11  ;;  %v816_v11 = vld [vmem:[%s1626_s2 + $0x28] sm:$0xff] }
 0x458   :  { %1192 = vmatmul.mubr.f32.vlgmr.msra.gmra.mxu1 %v466_v10  ;;  %v817_v10 = vld [vmem:[%s1626_s2 + $0x30] sm:$0xff] }
 0x459   :  { %1230 = vmatpush3.msra.mxu1 %v733_v19 }
 0x45a   :  { %1231 = vmatprep.subr.mxu1 %v732_v20 }
 0x45b   :  { %1232 = vmatpush3.msra.mxu1 %v732_v20 }
 0x45c   :  { %1233 = vmatprep.subr.mxu1 %v731_v21 }
 0x45d   :  { %1234 = vmatpush3.msra.mxu1 %v731_v21 }
 0x45e   :  { %1235 = vmatprep.subr.mxu1 %v730_v22 }
 0x45f   :  { %1236 = vmatpush3.msra.mxu1 %v730_v22 }
 0x460   :  { %1237 = vmatprep.subr.mxu1 %v729_v23 }
 0x461   :  { %1238 = vmatpush3.msra.mxu1 %v729_v23 }
 0x462   :  { %1239 = vmatprep.subr.mxu1 %v728_v24 }
 0x463   :  { %1240 = vmatpush3.msra.mxu1 %v728_v24 }
 0x464   :  { %1241 = vmatprep.subr.mxu1 %v727_v25 }
 0x465   :  { %1242 = vmatpush3.msra.mxu1 %v727_v25 }
 0x466   :  { %1243 = vmatprep.subr.mxu1 %v726_v26 }
 0x467   :  { %1244 = vmatpush3.msra.mxu1 %v726_v26 }
 0x468   :  { %1245 = vmatprep.subr.mxu1 %v725_v27 }
 0x469   :  { %1246 = vmatpush3.msra.mxu1 %v725_v27 }
 0x518   :  { %v1193_v28 = vpop.f32.mrf.mxu1 }
 0x519   :  { %v560_v30 = vadd.f32 %v1193_v28, %v1462_v62  ;;  %v724_v28 = vld [vmem:[#allocation2 + $0x2b0] sm:$0xff] }
 0x51a   :  { %v550_v31 = vpop.f32.mrf.mxu1  ;;  %1247 = vmatprep.subr.mxu1 %v724_v28 }
 0x51b   :  { %vm562_vm13 = vcmp.gt.f32.partialorder %v560_v30, 0.0  ;;  %v564_v34 = vmul.f32 0.01, %v560_v30  ;;  %v559_v35 = vadd.f32 %v550_v31, %v1466_v63  ;;  %1248 = vmatpush3.msra.mxu1 %v724_v28  ;;  %v721_v31 = vld [vmem:[#allocation2 + $0x298] sm:$0xff] }
 0x51c   :  { %1249 = vmatprep.subr.mxu1 %v723_v29 }
 0x51d   :  { %vm561_vm14 = vcmp.gt.f32.partialorder %v559_v35, 0.0  ;;  %v563_v36 = vmul.f32 0.01, %v559_v35  ;;  %v1521_v38 = vsel %vm562_vm13, %v560_v30, %v564_v34  ;;  %1250 = vmatpush3.msra.mxu1 %v723_v29  ;;  %v722_v30 = vld [vmem:[#allocation2 + $0x2a0] sm:$0xff]  ;;  %v719_v34 = vld [vmem:[#allocation2 + $0x288] sm:$0xff] }
 0x51e   :  { %581 = vrot.lane.b32.xlu1 %v1521_v38, %s1337_s1  ;;  %v574_v40 = vrot.slane %v1521_v38, 1  ;;  %v568_v42 = vrot.slane %v1521_v38, 7  ;;  %v810_v18 = vadd.f32 %v1434_v43, %v1521_v38  ;;  %1251 = vmatprep.subr.mxu1 %v722_v30 }
 0x51f   :  { %v565_v62 = vsel %vm561_vm14, %v559_v35, %v563_v36  ;;  %1252 = vmatpush3.msra.mxu1 %v722_v30  ;;  %v718_v35 = vld [vmem:[#allocation2 + $0x280] sm:$0xff] }
 0x520   :  { %579 = vrot.lane.b32.xlu0 %v565_v62, %s1337_s1  ;;  %v573_v39 = vrot.slane %v565_v62, 1  ;;  %v567_v41 = vrot.slane %v565_v62, 7  ;;  %v809_v5 = vadd.f32 %v1434_v43, %v565_v62  ;;  %1253 = vmatprep.subr.mxu1 %v721_v31 }
 0x521   :  { %1254 = vmatpush3.msra.mxu1 %v721_v31 }
 0x522   :  { %v576_v63 = vsel %vm75_vm0, %v574_v40, %v573_v39  ;;  %v575_v44 = vsel %vm75_vm0, %v573_v39, %v574_v40  ;;  %v569_v45 = vsel %vm68_vm3, %v567_v41, %v568_v42  ;;  %v570_v46 = vsel %vm68_vm3, %v568_v42, %v567_v41 }
 0x523   :  { %v578_v47 = vsel %vm1396_vm2, %v576_v63, 0.0  ;;  %v577_v48 = vsel %vm1386_vm1, %v575_v44, 0.0  ;;  %v572_v51 = vsel %vm1426_vm5, %v569_v45, 0.0  ;;  %v571_v52 = vsel %vm1415_vm4, %v570_v46, 0.0 }
 0x524   :  { %587 = vrot.lane.b32.xlu1 %v578_v47, %s1336_s16  ;;  %585 = vrot.lane.b32.xlu0 %v577_v48, %s1336_s16 }
 0x590   :  { %v582_v49 = vpop.permute.xlu1 %581 }
 0x591   :  { %v584_v53 = vadd.f32 %v582_v49, %v572_v51 }
 0x592   :  { %v580_v50 = vpop.permute.xlu0 %579 }
 0x593   :  { %v583_v54 = vadd.f32 %v580_v50, %v571_v52 }
 0x596   :  { %v588_v55 = vpop.permute.xlu1 %587  ;;  %v586_v56 = vpop.permute.xlu0 %585 }
 0x597   :  { %v590_v57 = vadd.f32 %v588_v55, %v584_v53  ;;  %v589_v58 = vadd.f32 %v586_v56, %v583_v54 }
 0x599   :  { %v592_v59 = vadd.f32 %v1434_v43, %v590_v57  ;;  %v591_v60 = vadd.f32 %v1434_v43, %v589_v58 }
 0x59b   :  { %1226 = vmatprep.mubr.f32.mxu0 %v591_v60 }
 0x59c   :  { %1227 = vmatmul.mubr.f32.vlgmr.msra.gmra.mxu0 %v592_v59 }
 0x59d   :  { %1265 = vmatpush3.msra.mxu0 %v826_v32  ;;  %1296 = vmatprep.mubr.f32.mxu0 %v809_v5  ;;  %v720_v32 = vld [vmem:[#allocation2 + $0x290] sm:$0xff] }
 0x59e   :  { %1266 = vmatprep.subr.mxu0 %v825_v61  ;;  %1255 = vmatprep.subr.mxu1 %v720_v32 }
 0x59f   :  { %1267 = vmatpush3.msra.mxu0 %v825_v61  ;;  %1256 = vmatpush3.msra.mxu1 %v720_v32 }
 0x5a0   :  { %1268 = vmatprep.subr.mxu0 %v824_v0  ;;  %1257 = vmatprep.subr.mxu1 %v719_v34 }
 0x5a1   :  { %1269 = vmatpush3.msra.mxu0 %v824_v0  ;;  %1258 = vmatpush3.msra.mxu1 %v719_v34 }
 0x5a2   :  { %1270 = vmatprep.subr.mxu0 %v823_v4  ;;  %1259 = vmatprep.subr.mxu1 %v718_v35 }
 0x5a3   :  { %1271 = vmatpush3.msra.mxu0 %v823_v4  ;;  %1260 = vmatpush3.msra.mxu1 %v718_v35 }
 0x5a4   :  { %1272 = vmatprep.subr.mxu0 %v822_v2 }
 0x5a5   :  { %1273 = vmatpush3.msra.mxu0 %v822_v2 }
 0x5a6   :  { %1274 = vmatprep.subr.mxu0 %v821_v3 }
 0x5a7   :  { %1275 = vmatpush3.msra.mxu0 %v821_v3 }
 0x5a8   :  { %1276 = vmatprep.subr.mxu0 %v820_v6 }
 0x5a9   :  { %1277 = vmatpush3.msra.mxu0 %v820_v6 }
 0x5aa   :  { %1278 = vmatprep.subr.mxu0 %v819_v7 }
 0x5ab   :  { %1279 = vmatpush3.msra.mxu0 %v819_v7 }
 0x5ac   :  { %1280 = vmatprep.subr.mxu0 %v818_v9 }
 0x5ad   :  { %1281 = vmatpush3.msra.mxu0 %v818_v9 }
 0x5ae   :  { %1282 = vmatprep.subr.mxu0 %v817_v10 }
 0x5af   :  { %1283 = vmatpush3.msra.mxu0 %v817_v10 }
 0x5b0   :  { %1284 = vmatprep.subr.mxu0 %v816_v11 }
 0x5b1   :  { %1285 = vmatpush3.msra.mxu0 %v816_v11 }
 0x5b2   :  { %1286 = vmatprep.subr.mxu0 %v815_v12 }
 0x5b3   :  { %1287 = vmatpush3.msra.mxu0 %v815_v12 }
 0x5b4   :  { %1288 = vmatprep.subr.mxu0 %v814_v14 }
 0x5b5   :  { %1289 = vmatpush3.msra.mxu0 %v814_v14 }
 0x5b6   :  { %1290 = vmatprep.subr.mxu0 %v813_v15 }
 0x5b7   :  { %1291 = vmatpush3.msra.mxu0 %v813_v15 }
 0x5b8   :  { %1292 = vmatprep.subr.mxu0 %v812_v16 }
 0x5b9   :  { %1293 = vmatpush3.msra.mxu0 %v812_v16 }
 0x5ba   :  { %1294 = vmatprep.subr.mxu0 %v811_v17 }
 0x5bb   :  { %1295 = vmatpush3.msra.mxu0 %v811_v17 }
 0x5bc   :  { %1297 = vmatmul.mubr.f32.vlgmr.msra.gmra.mxu0 %v810_v18 }
 0x65c   :  { %v1228_v36 = vpop.f32.mrf.mxu0 }
 0x65d   :  { %vm686_vm15 = vcmp.gt.f32.partialorder %v1228_v36, 0.0  ;;  %v688_v38 = vmul.f32 0.01, %v1228_v36 }
 0x65e   :  { %v676_v62 = vpop.f32.mrf.mxu0 }
 0x65f   :  { %vm685_vm6 = vcmp.gt.f32.partialorder %v676_v62, 0.0  ;;  %v687_v39 = vmul.f32 0.01, %v676_v62  ;;  %v690_v40 = vsel %vm686_vm15, %v1228_v36, %v688_v38 }
 0x660   :  { %705 = vrot.lane.b32.xlu1 %v690_v40, %s1337_s1  ;;  %v692_v42 = vrot.slane %v690_v40, 7  ;;  %v698_v63 = vrot.slane %v690_v40, 1 }
 0x661   :  { %v689_v41 = vsel %vm685_vm6, %v676_v62, %v687_v39 }
 0x662   :  { %703 = vrot.lane.b32.xlu0 %v689_v41, %s1337_s1  ;;  %v691_v44 = vrot.slane %v689_v41, 7  ;;  %v697_v45 = vrot.slane %v689_v41, 1 }
 0x664   :  { %v700_v46 = vsel %vm75_vm0, %v698_v63, %v697_v45  ;;  %v699_v47 = vsel %vm75_vm0, %v697_v45, %v698_v63  ;;  %v693_v48 = vsel %vm68_vm3, %v691_v44, %v692_v42  ;;  %v694_v49 = vsel %vm68_vm3, %v692_v42, %v691_v44 }
 0x665   :  { %v702_v50 = vsel %vm1396_vm2, %v700_v46, 0.0  ;;  %v701_v51 = vsel %vm1386_vm1, %v699_v47, 0.0  ;;  %v696_v54 = vsel %vm1426_vm5, %v693_v48, 0.0  ;;  %v695_v55 = vsel %vm1415_vm4, %v694_v49, 0.0 }
 0x666   :  { %711 = vrot.lane.b32.xlu1 %v702_v50, %s1336_s16  ;;  %709 = vrot.lane.b32.xlu0 %v701_v51, %s1336_s16 }
 0x67c   :  { %v1298_v61 = vpop.f32.mrf.mxu0 }
 0x67e   :  { %v893_v37 = vpop.f32.mrf.mxu0 }
 0x6d2   :  { %v706_v52 = vpop.permute.xlu1 %705 }
 0x6d3   :  { %v708_v1 = vadd.f32 %v706_v52, %v696_v54 }
 0x6d4   :  { %v704_v53 = vpop.permute.xlu0 %703 }
 0x6d5   :  { %v707_v56 = vadd.f32 %v704_v53, %v695_v55 }
 0x6d8   :  { %v712_v57 = vpop.permute.xlu1 %711  ;;  %v710_v13 = vpop.permute.xlu0 %709 }
 0x6d9   :  { %v714_v58 = vadd.f32 %v712_v57, %v708_v1  ;;  %v713_v59 = vadd.f32 %v710_v13, %v707_v56 }
 0x6db   :  { %v716_v8 = vadd.f32 %v1434_v43, %v714_v58  ;;  %v715_v60 = vadd.f32 %v1434_v43, %v713_v59 }
 0x6dd   :  { %1261 = vmatprep.mubr.f32.mxu1 %v715_v60 }
 0x6de   :  { %1262 = vmatmul.mubr.f32.vlgmr.msra.gmra.mxu1 %v716_v8 }
 0x79e   :  { %v1263_v5 = vpop.f32.mrf.mxu1 }
 0x79f   :  { %v899_v0 = vadd.f32 %v1298_v61, %v1263_v5 }
 0x7a0   :  { %v800_v4 = vpop.f32.mrf.mxu1 }
 0x7a1   :  { %v903_v2 = vsub.f32 0.0, %v899_v0  ;;  %v894_v33 = vadd.f32 %v893_v37, %v800_v4 }
 0x7a3   :  { %v906_v3 = vmul.f32 1.442695, %v903_v2  ;;  %v902_v6 = vsub.f32 0.0, %v894_v33 }
 0x7a5   :  { %1304 = vpow2.f32 %v906_v3  ;;  %v904_v7 = vmul.f32 1.442695, %v902_v6 }
 0x7a7   :  { %1306 = vpow2.f32 %v904_v7 }
 0x7b2   :  { %v1305_v9 = vpop.eup %1304 }
 0x7b3   :  { %v909_v10 = vadd.f32 1.0, %v1305_v9 }
 0x7b4   :  { %v1307_v11 = vpop.eup %1306 }
 0x7b5   :  { %1308 = vrcp.f32 %v909_v10  ;;  %v908_v12 = vadd.f32 1.0, %v1307_v11 }
 0x7b7   :  { %1310 = vrcp.f32 %v908_v12 }
 0x7c2   :  { %v1309_v43 = vpop.eup %1308 }
 0x7c3   :  { %v913_v14 = vmul.f32 64.0, %v1309_v43 }
 0x7c4   :  { %v1311_v15 = vpop.eup %1310 }
 0x7c5   :  { %v915_v16 = vadd.f32 1.0, %v913_v14  ;;  %v911_v17 = vmul.f32 64.0, %v1311_v15 }
 0x7c7   :  { %v917_v18 = vmax.f32 %v915_v16, 1.0  ;;  %v914_v19 = vadd.f32 1.0, %v911_v17 }
 0x7c9   :  { %v919_v20 = vmin.f32 %v917_v18, 64.0  ;;  %v916_v21 = vmax.f32 %v914_v19, 1.0 }
 0x7cb   :  { %921 = vst [vmem:[%s1627_s3 + $0x8] sm:$0xff] %v919_v20  ;;  %v918_v22 = vmin.f32 %v916_v21, 64.0 }
 0x7cd   :  { %920 = vst [vmem:[%s1627_s3] sm:$0xff] %v918_v22 }
 0x7ce   :  { %926 = vsyncpa [#allocation3], 1 }

</bundles_post_ra>
